<compile_context>
chip_gen: v6e
topology: v6e:2x2x1
jax: 0.10.0
libtpu: 0.0.40
codegen_flags: <defaults>
</compile_context>

<pallas_src>
import functools

import jax
import jax.numpy as jnp
from jax.experimental import pallas as pl
from jax.experimental.pallas import tpu as pltpu


def _focal_kernel(labels_ref, logits_ref, out_ref, *, gamma, seq_len,
                  cols_per_tile, steps_per_core, needs_mask, num_classes):
    p = pl.program_id(0)   # megacore split ("parallel")
    s = pl.program_id(1)   # sequential sweep over sequence tiles

    @pl.when(s == 0)
    def _():
        out_ref[...] = jnp.zeros_like(out_ref)

    logits = logits_ref[...].astype(jnp.float32)   # (B, C, K, 128)
    labels = labels_ref[...]                       # (B, K, 128) int32

    # log_softmax over axis 0 (batch) — reproduces F.log_softmax's legacy
    # default dim for 3-D input in the PyTorch reference (NOT the class axis;
    # kept for exact fidelity with the module).
    m = jnp.max(logits, axis=0, keepdims=True)                  # (1, C, K, 128)
    z = logits - m
    lse = jnp.log(jnp.sum(jnp.exp(z), axis=0, keepdims=True))   # (1, C, K, 128)
    log_p = z - lse                                             # (B, C, K, 128)

    # One-hot sparsity:
    #   sum fl / (-alpha) = sum_{b,c} log_p + sum_b ((1-lp)^gamma - 1) * lp
    # with lp = log_p at the label class, so only the gathered lp (a factor-C
    # less data) goes through the pow/mul chain.
    sum_lp = jnp.sum(log_p, axis=(0, 1))                        # (K, 128)

    class_ids = jax.lax.broadcasted_iota(
        jnp.int32, (1, num_classes, 1, 128), 1)                 # minimal iota
    hit = labels[:, None, :, :] == class_ids                    # (B, C, K, 128)
    lp = jnp.sum(jnp.where(hit, log_p, 0.0), axis=1)            # (B, K, 128)

    corr = ((1.0 - lp) ** gamma - 1.0) * lp                     # (B, K, 128)
    partial = sum_lp + jnp.sum(corr, axis=0)                    # (K, 128)

    k = cols_per_tile

    def _accumulate(vals):
        # Fold K columns -> 8 sublanes (pure VPU adds over a leading axis) and
        # accumulate into the resident, lane-dense (1, 8, 128) output block.
        out_ref[...] = out_ref[...] + jnp.sum(
            vals.reshape(1, k // 8, 8, 128), axis=1)

    if needs_mask:
        # Padding lives only at the end of the flattened sequence: interior
        # tiles accumulate unmasked, the single boundary tile pays for the
        # mask, fully padded tiles are skipped entirely.
        tile_start = (p * steps_per_core + s) * (k * 128)
        fully_valid = tile_start + k * 128 <= seq_len
        has_data = tile_start < seq_len

        @pl.when(fully_valid)
        def _():
            _accumulate(partial)

        @pl.when(jnp.logical_and(has_data, jnp.logical_not(fully_valid)))
        def _():
            col = jax.lax.broadcasted_iota(jnp.int32, (k, 128), 0)
            lane = jax.lax.broadcasted_iota(jnp.int32, (k, 128), 1)
            seq = tile_start + col * 128 + lane
            _accumulate(jnp.where(seq < seq_len, partial, 0.0))
    else:
        _accumulate(partial)


def _tpu_limits():
    """Returns (vmem_limit_bytes, tile_budget_bytes, multi_tensorcore)."""
    vmem_cap = None
    kind = ""
    try:
        vmem_cap = getattr(pltpu.get_tpu_info(), "vmem_capacity_bytes", None)
    except Exception:
        pass
    try:
        kind = jax.devices()[0].device_kind.lower()
    except Exception:
        pass
    multi_tc = any(t in kind for t in ("v4", "v5p", "v7", "tpu7"))
    if vmem_cap is not None and vmem_cap >= 100 * 1024 * 1024:
        # v5e / v6e: 128 MiB physical VMEM per TensorCore.  (On v5e the default
        # scoped limit is only 16 MiB, so the explicit limit is mandatory.)
        return 64 * 1024 * 1024, 40 * 1024 * 1024, multi_tc
    # v7x (64 MiB per TC) or unknown generation: stay conservative.
    return 32 * 1024 * 1024, 18 * 1024 * 1024, multi_tc


def focal_loss(logits, labels, *, gamma=2, alpha=1.0, size_average=True):
    """logits: (B, C, S) float; labels: (B, S) int. Returns scalar f32.

    Implements the documented 3-D/2-D path of FocalLoss.forward.  The >3-D /
    >2-D preamble in the PyTorch module is a pure reshape and can be applied
    before calling this wrapper.
    """
    B, C, S = logits.shape
    assert labels.shape == (B, S)
    labels = labels.astype(jnp.int32)

    # Integral gamma -> python int so `** gamma` lowers to integer_pow (VPU).
    if float(gamma) == int(gamma):
        gamma = int(gamma)

    itemsize = jnp.dtype(logits.dtype).itemsize
    # Sublane multiple for the logits block's second-to-last dim:
    # 8 for f32, 16 for bf16, 32 for int8/fp8 (labels are int32 -> 8).
    sub_mult = max(8, 32 // itemsize)

    NB = (S + 127) // 128                      # 128-lane columns of real data

    vmem_limit, budget, multi_tc = _tpu_limits()

    # Megacore split only on multi-TC chips and only when there is enough work
    # to amortize the extra rounding; on single-TC v5e/v6e it is pure overhead.
    P = 2 if (multi_tc and NB >= 64) else 1

    # VMEM per 128-lane column: double-buffered pipelined inputs plus ~4
    # full-tile f32 temporaries kept live by the elementwise chain (f32 cast,
    # z, exp(z), log_p/select).  K is capped at 512: >=512-wide streaming tiles
    # already sit at the tiling plateau (~85% of HBM roofline).
    in_col = B * C * 128 * itemsize + B * 128 * 4
    tmp_col = B * C * 128 * 4
    bytes_per_col = 2 * in_col + 4 * tmp_col
    k_budget = max(sub_mult, (budget // bytes_per_col) // sub_mult * sub_mult)
    K_cap = max(sub_mult, min(k_budget, 512))

    cdiv = lambda a, b: (a + b - 1) // b
    steps = max(1, cdiv(NB, P * K_cap))
    K = cdiv(max(1, cdiv(NB, P * steps)), sub_mult) * sub_mult
    NBpad = P * K * steps
    Spad = NBpad * 128
    pad = Spad - S

    # Logits stream through in their input dtype (e.g. bf16 stays bf16 over
    # HBM/DMA); the f32 cast happens on the VMEM tile inside the kernel.
    if pad:
        logits = jnp.pad(logits, ((0, 0), (0, 0), (0, pad)))
        labels = jnp.pad(labels, ((0, 0), (0, pad)), constant_values=-1)

    logits_r = logits.reshape(B, C, NBpad, 128)
    labels_r = labels.reshape(B, NBpad, 128)

    kernel = functools.partial(
        _focal_kernel,
        gamma=gamma,
        seq_len=S,
        cols_per_tile=K,
        steps_per_core=steps,
        needs_mask=(pad != 0),
        num_classes=C,
    )

    out = pl.pallas_call(
        kernel,
        out_shape=jax.ShapeDtypeStruct((P, 8, 128), jnp.float32),
        grid_spec=pltpu.PrefetchScalarGridSpec(
            num_scalar_prefetch=0,
            grid=(P, steps),
            in_specs=[
                pl.BlockSpec((B, K, 128),
                             lambda p, s: (0, p * steps + s, 0)),      # labels
                pl.BlockSpec((B, C, K, 128),
                             lambda p, s: (0, 0, p * steps + s, 0)),   # logits
            ],
            out_specs=pl.BlockSpec((1, 8, 128),
                                   lambda p, s: (p, 0, 0)),            # resident acc
        ),
        compiler_params=pltpu.CompilerParams(
            dimension_semantics=("parallel", "arbitrary"),
            vmem_limit_bytes=vmem_limit,
        ),
    )(labels_r, logits_r)

    # (-alpha) is hoisted to a single scalar multiply here instead of a
    # per-element multiply in the kernel (VALU is the binding slot on v6e/v7x).
    total = (-float(alpha)) * out.sum()
    if size_average:
        total = total / jnp.float32(B * C * S)
    return total


def focal_loss_ref(logits, labels, *, gamma=2, alpha=1.0, size_average=True):
    """Pure-JAX reference mirroring the PyTorch forward exactly."""
    log_p = jax.nn.log_softmax(logits, axis=0)  # legacy default dim for 3-D
    onehot = jax.nn.one_hot(labels, logits.shape[1], axis=1, dtype=jnp.float32)
    pt = onehot * log_p
    fl = -alpha * (1.0 - pt) ** gamma * log_p
    return fl.mean() if size_average else fl.sum()


if __name__ == "__main__":
    key = jax.random.PRNGKey(0)
    k1, k2, k3, k4 = jax.random.split(key, 4)

    # Case 1: lane-aligned sequence, mean reduction.
    B, C, S = 2, 4, 256
    logits = jax.random.normal(k1, (B, C, S), dtype=jnp.float32)
    labels = jax.random.randint(k2, (B, S), 0, C, dtype=jnp.int32)
    out = jax.block_until_ready(
        focal_loss(logits, labels, gamma=2, alpha=1.0, size_average=True))
    ref = focal_loss_ref(logits, labels, gamma=2, alpha=1.0, size_average=True)
    assert jnp.allclose(out, ref, rtol=1e-5, atol=1e-5), (out, ref)

    # Case 2: unaligned sequence (exercises padding + boundary-tile mask), sum.
    B2, C2, S2 = 2, 5, 200
    logits2 = jax.random.normal(k3, (B2, C2, S2), dtype=jnp.float32)
    labels2 = jax.random.randint(k4, (B2, S2), 0, C2, dtype=jnp.int32)
    out2 = jax.block_until_ready(
        focal_loss(logits2, labels2, gamma=2, alpha=0.5, size_average=False))
    ref2 = focal_loss_ref(logits2, labels2, gamma=2, alpha=0.5,
                          size_average=False)
    assert jnp.allclose(out2, ref2, rtol=1e-5, atol=1e-4), (out2, ref2)

    print("KERNEL_OK")
</pallas_src>

<mosaic_0001>
module attributes {stable_mosaic.version = 11 : i64} {
  func.func @_focal_kernel(%arg0: i32, %arg1: i32, %arg2: memref<2x8x128xi32, #tpu.memory_space<vmem>>, %arg3: memref<2x4x8x128xf32, #tpu.memory_space<vmem>>, %arg4: memref<1x8x128xf32, #tpu.memory_space<vmem>>) attributes {dimension_semantics = [#tpu.dimension_semantics<parallel>, #tpu.dimension_semantics<arbitrary>], iteration_bounds = array<i64: 1, 1>, scalar_prefetch = 0 : i64, scratch_operands = 0 : i64, tpu.core_type = #tpu.core_type<tc>, window_params = [{transform_indices = @transform_0, window_bounds = array<i64: 2, 8, 128>}, {transform_indices = @transform_1, window_bounds = array<i64: 2, 4, 8, 128>}, {transform_indices = @transform_2, window_bounds = array<i64: 1, 8, 128>}]} {
    %c0_i32 = arith.constant 0 : i32
    %0 = arith.cmpi eq, %arg1, %c0_i32 : i32
    %1 = arith.extui %0 : i1 to i32
    %c0_i32_0 = arith.constant 0 : i32
    %2 = arith.cmpi ne, %1, %c0_i32_0 : i32
    scf.if %2 {
      %cst_18 = arith.constant 0.000000e+00 : f32
      %44 = vector.broadcast %cst_18 : f32 to vector<1x8x128xf32>
      %c0_19 = arith.constant 0 : index
      %c0_20 = arith.constant 0 : index
      %c0_21 = arith.constant 0 : index
      %45 = vector.load %arg4[%c0_19, %c0_20, %c0_21] : memref<1x8x128xf32, #tpu.memory_space<vmem>>, vector<1x8x128xf32>
      tpu.vector_store %arg4[%c0_19, %c0_20, %c0_21], %44 {strides = array<i32>} : memref<1x8x128xf32, #tpu.memory_space<vmem>>, vector<1x8x128xf32>,
    } else {
    }
    %c0 = arith.constant 0 : index
    %c0_1 = arith.constant 0 : index
    %c0_2 = arith.constant 0 : index
    %c0_3 = arith.constant 0 : index
    %3 = vector.load %arg3[%c0, %c0_1, %c0_2, %c0_3] : memref<2x4x8x128xf32, #tpu.memory_space<vmem>>, vector<2x4x8x128xf32>
    %c0_4 = arith.constant 0 : index
    %c0_5 = arith.constant 0 : index
    %c0_6 = arith.constant 0 : index
    %4 = vector.load %arg2[%c0_4, %c0_5, %c0_6] : memref<2x8x128xi32, #tpu.memory_space<vmem>>, vector<2x8x128xi32>
    %cst = arith.constant dense<0xFF800000> : vector<4x8x128xf32>
    %5 = vector.multi_reduction <maximumf>, %3, %cst [0] : vector<2x4x8x128xf32> to vector<4x8x128xf32>
    %6 = vector.shape_cast %5 : vector<4x8x128xf32> to vector<1x4x8x128xf32>
    %7 = vector.broadcast %6 : vector<1x4x8x128xf32> to vector<2x4x8x128xf32>
    %8 = arith.subf %3, %7 : vector<2x4x8x128xf32>
    %9 = math.exp %8 : vector<2x4x8x128xf32>
    %cst_7 = arith.constant dense<0.000000e+00> : vector<4x8x128xf32>
    %10 = vector.multi_reduction <add>, %9, %cst_7 [0] : vector<2x4x8x128xf32> to vector<4x8x128xf32>
    %11 = vector.shape_cast %10 : vector<4x8x128xf32> to vector<1x4x8x128xf32>
    %12 = math.log %11 : vector<1x4x8x128xf32>
    %13 = vector.broadcast %12 : vector<1x4x8x128xf32> to vector<2x4x8x128xf32>
    %14 = arith.subf %8, %13 : vector<2x4x8x128xf32>
    %cst_8 = arith.constant dense<0.000000e+00> : vector<8x128xf32>
    %15 = vector.multi_reduction <add>, %14, %cst_8 [0, 1] : vector<2x4x8x128xf32> to vector<8x128xf32>
    %16 = tpu.iota {dimensions = array<i32: 1>} : vector<1x4x1x128xi32>
    %17 = vector.shape_cast %4 : vector<2x8x128xi32> to vector<2x1x8x128xi32>
    %18 = vector.broadcast %17 : vector<2x1x8x128xi32> to vector<2x4x8x128xi32>
    %19 = vector.broadcast %16 : vector<1x4x1x128xi32> to vector<2x4x8x128xi32>
    %20 = arith.cmpi eq, %18, %19 : vector<2x4x8x128xi32>
    %cst_9 = arith.constant 0.000000e+00 : f32
    %21 = vector.broadcast %cst_9 : f32 to vector<2x4x8x128xf32>
    %22 = arith.select %20, %14, %21 : vector<2x4x8x128xi1>, vector<2x4x8x128xf32>
    %cst_10 = arith.constant dense<0.000000e+00> : vector<2x8x128xf32>
    %23 = vector.multi_reduction <add>, %22, %cst_10 [1] : vector<2x4x8x128xf32> to vector<2x8x128xf32>
    %cst_11 = arith.constant 1.000000e+00 : f32
    %24 = vector.broadcast %cst_11 : f32 to vector<2x8x128xf32>
    %25 = arith.subf %24, %23 : vector<2x8x128xf32>
    %26 = arith.mulf %25, %25 : vector<2x8x128xf32>
    %cst_12 = arith.constant 1.000000e+00 : f32
    %27 = vector.broadcast %cst_12 : f32 to vector<2x8x128xf32>
    %28 = arith.subf %26, %27 : vector<2x8x128xf32>
    %29 = arith.mulf %28, %23 : vector<2x8x128xf32>
    %cst_13 = arith.constant dense<0.000000e+00> : vector<8x128xf32>
    %30 = vector.multi_reduction <add>, %29, %cst_13 [0] : vector<2x8x128xf32> to vector<8x128xf32>
    %31 = arith.addf %15, %30 : vector<8x128xf32>
    %c1_i32 = arith.constant 1 : i32
    %32 = arith.muli %arg0, %c1_i32 : i32
    %33 = arith.addi %32, %arg1 : i32
    %c1024_i32 = arith.constant 1024 : i32
    %34 = arith.muli %33, %c1024_i32 : i32
    %c1024_i32_14 = arith.constant 1024 : i32
    %35 = arith.addi %34, %c1024_i32_14 : i32
    %c256_i32 = arith.constant 256 : i32
    %36 = arith.cmpi sle, %35, %c256_i32 : i32
    %c256_i32_15 = arith.constant 256 : i32
    %37 = arith.cmpi slt, %34, %c256_i32_15 : i32
    %38 = arith.extui %36 : i1 to i32
    %c0_i32_16 = arith.constant 0 : i32
    %39 = arith.cmpi ne, %38, %c0_i32_16 : i32
    scf.if %39 {
      %c0_18 = arith.constant 0 : index
      %c0_19 = arith.constant 0 : index
      %c0_20 = arith.constant 0 : index
      %44 = vector.load %arg4[%c0_18, %c0_19, %c0_20] : memref<1x8x128xf32, #tpu.memory_space<vmem>>, vector<1x8x128xf32>
      %45 = vector.shape_cast %31 : vector<8x128xf32> to vector<1x1x8x128xf32>
      %cst_21 = arith.constant dense<0.000000e+00> : vector<1x8x128xf32>
      %46 = vector.multi_reduction <add>, %45, %cst_21 [1] : vector<1x1x8x128xf32> to vector<1x8x128xf32>
      %47 = arith.addf %44, %46 : vector<1x8x128xf32>
      %c0_22 = arith.constant 0 : index
      %c0_23 = arith.constant 0 : index
      %c0_24 = arith.constant 0 : index
      %48 = vector.load %arg4[%c0_22, %c0_23, %c0_24] : memref<1x8x128xf32, #tpu.memory_space<vmem>>, vector<1x8x128xf32>
      tpu.vector_store %arg4[%c0_22, %c0_23, %c0_24], %47 {strides = array<i32>} : memref<1x8x128xf32, #tpu.memory_space<vmem>>, vector<1x8x128xf32>,
    } else {
    }
    %true = arith.constant true
    %40 = arith.xori %36, %true : i1
    %41 = arith.andi %37, %40 : i1
    %42 = arith.extui %41 : i1 to i32
    %c0_i32_17 = arith.constant 0 : i32
    %43 = arith.cmpi ne, %42, %c0_i32_17 : i32
    scf.if %43 {
      %44 = tpu.iota {dimensions = array<i32: 0>} : vector<8x128xi32>
      %45 = tpu.iota {dimensions = array<i32: 1>} : vector<8x128xi32>
      %c128_i32 = arith.constant 128 : i32
      %46 = vector.broadcast %c128_i32 : i32 to vector<8x128xi32>
      %47 = arith.muli %44, %46 : vector<8x128xi32>
      %48 = vector.broadcast %34 : i32 to vector<8x128xi32>
      %49 = arith.addi %48, %47 : vector<8x128xi32>
      %50 = arith.addi %49, %45 : vector<8x128xi32>
      %c256_i32_18 = arith.constant 256 : i32
      %51 = vector.broadcast %c256_i32_18 : i32 to vector<8x128xi32>
      %52 = arith.cmpi slt, %50, %51 : vector<8x128xi32>
      %cst_19 = arith.constant 0.000000e+00 : f32
      %53 = vector.broadcast %cst_19 : f32 to vector<8x128xf32>
      %54 = arith.select %52, %31, %53 : vector<8x128xi1>, vector<8x128xf32>
      %c0_20 = arith.constant 0 : index
      %c0_21 = arith.constant 0 : index
      %c0_22 = arith.constant 0 : index
      %55 = vector.load %arg4[%c0_20, %c0_21, %c0_22] : memref<1x8x128xf32, #tpu.memory_space<vmem>>, vector<1x8x128xf32>
      %56 = vector.shape_cast %54 : vector<8x128xf32> to vector<1x1x8x128xf32>
      %cst_23 = arith.constant dense<0.000000e+00> : vector<1x8x128xf32>
      %57 = vector.multi_reduction <add>, %56, %cst_23 [1] : vector<1x1x8x128xf32> to vector<1x8x128xf32>
      %58 = arith.addf %55, %57 : vector<1x8x128xf32>
      %c0_24 = arith.constant 0 : index
      %c0_25 = arith.constant 0 : index
      %c0_26 = arith.constant 0 : index
      %59 = vector.load %arg4[%c0_24, %c0_25, %c0_26] : memref<1x8x128xf32, #tpu.memory_space<vmem>>, vector<1x8x128xf32>
      tpu.vector_store %arg4[%c0_24, %c0_25, %c0_26], %58 {strides = array<i32>} : memref<1x8x128xf32, #tpu.memory_space<vmem>>, vector<1x8x128xf32>,
    } else {
    }
    return
  }
  func.func @transform_0(%arg0: i32, %arg1: i32) -> (i32, i32, i32) {
    %c1_i32 = arith.constant 1 : i32
    %0 = arith.muli %arg0, %c1_i32 : i32
    %1 = arith.addi %0, %arg1 : i32
    %c0_i32 = arith.constant 0 : i32
    %c0_i32_0 = arith.constant 0 : i32
    %c0_i32_1 = arith.constant 0 : i32
    return %c0_i32, %1, %c0_i32_0 : i32, i32, i32
  }
  func.func @transform_1(%arg0: i32, %arg1: i32) -> (i32, i32, i32, i32) {
    %c1_i32 = arith.constant 1 : i32
    %0 = arith.muli %arg0, %c1_i32 : i32
    %1 = arith.addi %0, %arg1 : i32
    %c0_i32 = arith.constant 0 : i32
    %c0_i32_0 = arith.constant 0 : i32
    %c0_i32_1 = arith.constant 0 : i32
    %c0_i32_2 = arith.constant 0 : i32
    return %c0_i32, %c0_i32_0, %1, %c0_i32_1 : i32, i32, i32, i32
  }
  func.func @transform_2(%arg0: i32, %arg1: i32) -> (i32, i32, i32) {
    %c0_i32 = arith.constant 0 : i32
    %c0_i32_0 = arith.constant 0 : i32
    %c0_i32_1 = arith.constant 0 : i32
    return %arg0, %c0_i32, %c0_i32_0 : i32, i32, i32
  }
}

</mosaic_0001>

<bundles_post_ra>
// kernel: tpu_custom_call.1
= control target key start
LH: loop header
LB: loop body
LE: loop exit
PB: predicated region body
PF: predicated region fallthrough
CT: control target
= control target key end

     0   :  { %7 = vsyncpa [#allocation3], 0  ;;  %s334_s0 = inlined_call_operand.hbm [shape: s32[2,8,128], index: 0, kind: input, shape index: {}]   ;;  %s335_s1 = inlined_call_operand.hbm [shape: f32[2,4,8,128], index: 1, kind: input, shape index: {}]   ;;  %s336_s2 = inlined_call_operand.hbm [shape: f32[1,8,128], index: 2, kind: output, shape index: {}]  }
   0x1   :  { %8 = vsyncpa [#allocation6], 0 }
   0x2   :  { %9 = vsyncpa [#allocation4], 0  ;;  %s295_s9 = smov [#allocation2]  }
   0x3   :  { %s18_s10 = sshll.u32 %s295_s9, 4  ;;  %s19_s10 = int_to_ptr.vmem [resolvable:$true] %s18_s10 }
   0x4   :  { %s237_s11 = scalar_lea.vmem %s19_s10, 256  ;;  %p242_p1 = scmp.lt.s32.totalorder %s19_s10, %s19_s10 }
   0x5   :  { %p238_p0 = scmp.ne.s32.totalorder %s19_s10, %s237_s11  ;;  %p243_p2 = scmp.lt.s32.totalorder %s237_s11, %s237_s11 }
   0x7   :  { %p244_p3 = por %p243_p2, %p242_p1 }
   0x9   :  { %p245_p4 = pnand %p244_p3, %p238_p0 }
   0xb   :  { %248 = shalt.err (!%p245_p4)
}
   0xc   :  { %s296_s12 = smov 128   ;;  %s297_s13 = smov 8  }
   0xd   :  { %24 = dma.hbm_to_vmem [thread:$0]  %s334_s0, 256, %s19_s10, [#allocation3], %s296_s12, %s296_s12, %s297_s13  }
   0xe   :  { %s298_s16 = smov [#allocation5]  }
   0xf   :  { %s33_s17 = sshll.u32 %s298_s16, 4  ;;  %s34_s17 = int_to_ptr.vmem [resolvable:$true] %s33_s17 }
  0x10   :  { %s257_s18 = scalar_lea.vmem %s34_s17, 1024  ;;  %p262_p6 = scmp.lt.s32.totalorder %s34_s17, %s34_s17 }
  0x11   :  { %p258_p5 = scmp.ne.s32.totalorder %s34_s17, %s257_s18  ;;  %p263_p7 = scmp.lt.s32.totalorder %s257_s18, %s257_s18 }
  0x13   :  { %p264_p8 = por %p263_p7, %p262_p6 }
  0x15   :  { %p265_p9 = pnand %p264_p8, %p258_p5 }
  0x17   :  { %268 = shalt.err (!%p265_p9)
}
  0x18   :  { %39 = dma.hbm_to_vmem [thread:$0]  %s335_s1, 1024, %s34_s17, [#allocation6], %s296_s12, %s296_s12, %s297_s13  }
  0x19   :  { %289 = dma.done.wait [#allocation3], 256  }
  0x1a   :  { %290 = vsyncadd [#allocation3], 4294967040 }
  0x1b   :  { %291 = dma.done.wait [#allocation6], 1024  }
  0x1c   :  { %292 = vsyncadd [#allocation6], 4294966272  ;;  %v53_v0 = vld [vmem:[#allocation5] sm:$0xff]  ;;  %v54_v1 = vld [vmem:[#allocation5 + $0x8] sm:$0xff]  ;;  %v167_v43 = vlaneseq  ;;  %s299_s0 = smov [#allocation7]  }
  0x1d   :  { %v55_v2 = vld [vmem:[#allocation5 + $0x10] sm:$0xff]  ;;  %v56_v3 = vld [vmem:[#allocation5 + $0x18] sm:$0xff]  ;;  %v57_v4 = vld [vmem:[#allocation5 + $0x20] sm:$0xff]  ;;  %s187_s1 = sshll.u32 %s299_s0, 4  ;;  %s188_s1 = int_to_ptr.vmem [resolvable:$true] %s187_s1 }
  0x1e   :  { %v58_v5 = vld [vmem:[#allocation5 + $0x28] sm:$0xff]  ;;  %v59_v6 = vld [vmem:[#allocation5 + $0x30] sm:$0xff]  ;;  %v60_v7 = vld [vmem:[#allocation5 + $0x38] sm:$0xff]  ;;  %v63_v8 = vmax.f32 %v53_v0, %v57_v4  ;;  %s269_s21 = scalar_lea.vmem %s188_s1, 128  ;;  %p274_p11 = scmp.lt.s32.totalorder %s188_s1, %s188_s1 }
  0x1f   :  { %v64_v9 = vmax.f32 %v54_v1, %v58_v5  ;;  %v65_v10 = vmax.f32 %v55_v2, %v59_v6  ;;  %v66_v11 = vmax.f32 %v56_v3, %v60_v7  ;;  %v61_v40 = vld [vmem:[#allocation2] sm:$0xff]  ;;  %v62_v41 = vld [vmem:[#allocation2 + $0x8] sm:$0xff]  ;;  %p270_p10 = scmp.ne.s32.totalorder %s188_s1, %s269_s21  ;;  %p275_p12 = scmp.lt.s32.totalorder %s269_s21, %s269_s21 }
  0x20   :  { %v67_v12 = vsub.f32 %v53_v0, %v63_v8  ;;  %v71_v14 = vsub.f32 %v57_v4, %v63_v8  ;;  %vm118_vm0 = vcmp.eq.s32.totalorder %v61_v40, 0  ;;  %vm119_vm1 = vcmp.eq.s32.totalorder %v61_v40, 1 }
  0x21   :  { %v68_v13 = vsub.f32 %v54_v1, %v64_v9  ;;  %v69_v15 = vsub.f32 %v55_v2, %v65_v10  ;;  %v321_v16 = vsub.f32 %v56_v3, %v66_v11  ;;  %v72_v17 = vsub.f32 %v58_v5, %v64_v9  ;;  %p276_p13 = por %p275_p12, %p274_p11 }
  0x22   :  { %v73_v18 = vsub.f32 %v59_v6, %v65_v10  ;;  %v75_v19 = vmul.f32 1.442695, %v67_v12  ;;  %v74_v21 = vsub.f32 %v60_v7, %v66_v11  ;;  %v83_v24 = vmul.f32 1.442695, %v71_v14 }
  0x23   :  { %v77_v20 = vmul.f32 1.442695, %v68_v13  ;;  %v79_v22 = vmul.f32 1.442695, %v69_v15  ;;  %v81_v23 = vmul.f32 1.442695, %v321_v16  ;;  %p277_p0 = pnand %p276_p13, %p270_p10 }
  0x24   :  { %205 = vpow2.f32 %v75_v19  ;;  %v85_v25 = vmul.f32 1.442695, %v72_v17  ;;  %v87_v26 = vmul.f32 1.442695, %v73_v18  ;;  %v89_v27 = vmul.f32 1.442695, %v74_v21 }
  0x25   :  { %207 = vpow2.f32 %v77_v20  ;;  %vm120_vm2 = vcmp.eq.s32.totalorder %v61_v40, 2  ;;  %vm121_vm3 = vcmp.eq.s32.totalorder %v61_v40, 3  ;;  %vm122_vm4 = vcmp.eq.s32.totalorder %v62_v41, 0 }
  0x26   :  { %209 = vpow2.f32 %v79_v22  ;;  %vm123_vm5 = vcmp.eq.s32.totalorder %v62_v41, 1  ;;  %vm124_vm6 = vcmp.eq.s32.totalorder %v62_v41, 2  ;;  %vm125_vm7 = vcmp.eq.s32.totalorder %v62_v41, 3 }
  0x27   :  { %211 = vpow2.f32 %v81_v23  ;;  %v168_v11 = vshrl.u32 %v167_v43, 7 }
  0x28   :  { %213 = vpow2.f32 %v83_v24 }
  0x29   :  { %215 = vpow2.f32 %v85_v25  ;;  %v171_v19 = vmul.u32 128, %v168_v11 }
  0x2a   :  { %217 = vpow2.f32 %v87_v26 }
  0x2b   :  { %219 = vpow2.f32 %v89_v27 }
  0x31   :  { %v206_v28 = vpop.eup %205 }
  0x32   :  { %v208_v29 = vpop.eup %207 }
  0x33   :  { %v210_v30 = vpop.eup %209 }
  0x34   :  { %v212_v31 = vpop.eup %211 }
  0x35   :  { %v214_v32 = vpop.eup %213 }
  0x36   :  { %v216_v33 = vpop.eup %215  ;;  %v91_v34 = vadd.f32 %v214_v32, %v206_v28 }
  0x37   :  { %v218_v35 = vpop.eup %217  ;;  %v92_v36 = vadd.f32 %v216_v33, %v208_v29 }
  0x38   :  { %v220_v37 = vpop.eup %219  ;;  %v93_v38 = vadd.f32 %v218_v35, %v210_v30  ;;  %221 = vlog2.f32 %v91_v34 }
  0x39   :  { %v94_v39 = vadd.f32 %v220_v37, %v212_v31  ;;  %223 = vlog2.f32 %v92_v36 }
  0x3a   :  { %225 = vlog2.f32 %v93_v38 }
  0x3b   :  { %227 = vlog2.f32 %v94_v39 }
  0x45   :  { %v222_v42 = vpop.eup %221 }
  0x46   :  { %v224_v44 = vpop.eup %223  ;;  %v96_v45 = vmul.f32 0.6931472, %v222_v42 }
  0x47   :  { %v226_v46 = vpop.eup %225  ;;  %v98_v47 = vmul.f32 0.6931472, %v224_v44 }
  0x48   :  { %v228_v48 = vpop.eup %227  ;;  %v100_v49 = vmul.f32 0.6931472, %v226_v46  ;;  %v103_v50 = vsub.f32 %v67_v12, %v96_v45  ;;  %v107_v51 = vsub.f32 %v71_v14, %v96_v45 }
  0x49   :  { %v102_v52 = vmul.f32 0.6931472, %v228_v48  ;;  %v104_v53 = vsub.f32 %v68_v13, %v98_v47  ;;  %v108_v54 = vsub.f32 %v72_v17, %v98_v47 }
  0x4a   :  { %v105_v55 = vsub.f32 %v69_v15, %v100_v49  ;;  %v109_v56 = vsub.f32 %v73_v18, %v100_v49  ;;  %v126_v57 = vsel %vm118_vm0, %v103_v50, 0.0  ;;  %v130_v58 = vsel %vm122_vm4, %v107_v51, 0.0 }
  0x4b   :  { %v106_v59 = vsub.f32 %v321_v16, %v102_v52  ;;  %v110_v60 = vsub.f32 %v74_v21, %v102_v52  ;;  %v111_v61 = vadd.f32 %v104_v53, %v103_v50  ;;  %v127_v62 = vsel %vm119_vm1, %v104_v53, 0.0 }
  0x4c   :  { %v128_v63 = vsel %vm120_vm2, %v105_v55, 0.0  ;;  %v131_v0 = vsel %vm123_vm5, %v108_v54, 0.0  ;;  %v132_v1 = vsel %vm124_vm6, %v109_v56, 0.0  ;;  %v134_v2 = vadd.f32 %v127_v62, %v126_v57 }
  0x4d   :  { %v112_v3 = vadd.f32 %v111_v61, %v105_v55  ;;  %v129_v4 = vsel %vm121_vm3, %v106_v59, 0.0  ;;  %v137_v5 = vadd.f32 %v131_v0, %v130_v58  ;;  %v133_v6 = vsel %vm125_vm7, %v110_v60, 0.0 }
  0x4e   :  { %v135_v7 = vadd.f32 %v134_v2, %v128_v63  ;;  %v170_v18 = vand.u32 127, %v167_v43 }
  0x4f   :  { %v113_v8 = vadd.f32 %v112_v3, %v106_v59  ;;  %v138_v9 = vadd.f32 %v137_v5, %v132_v1 }
  0x50   :  { %v136_v10 = vadd.f32 %v135_v7, %v129_v4  ;;  %v174_v25 = vadd.s32 %v171_v19, %v170_v18 }
  0x51   :  { %v114_v12 = vadd.f32 %v113_v8, %v107_v51  ;;  %v139_v13 = vadd.f32 %v138_v9, %v133_v6 }
  0x52   :  { %v140_v14 = vsub.f32 1.0, %v136_v10  ;;  %vm175_vm8 = vcmp.lt.s32.totalorder %v174_v25, 256 }
  0x53   :  { %v115_v15 = vadd.f32 %v114_v12, %v108_v54  ;;  %v141_v16 = vsub.f32 1.0, %v139_v13 }
  0x54   :  { %v142_v17 = vmul.f32 %v140_v14, %v140_v14 }
  0x55   :  { %v116_v20 = vadd.f32 %v115_v15, %v109_v56  ;;  %v143_v21 = vmul.f32 %v141_v16, %v141_v16 }
  0x56   :  { %v197_v22 = vadd.f32 -1.0, %v142_v17 }
  0x57   :  { %v198_v23 = vadd.f32 -1.0, %v143_v21  ;;  %v117_v26 = vadd.f32 %v116_v20, %v110_v60 }
  0x58   :  { %v146_v24 = vmul.f32 %v197_v22, %v136_v10 }
  0x59   :  { %v147_v27 = vmul.f32 %v198_v23, %v139_v13 }
  0x5b   :  { %v148_v28 = vadd.f32 %v147_v27, %v146_v24 }
  0x5d   :  { %v149_v29 = vadd.f32 %v148_v28, %v117_v26 }
  0x5f   :  { %v176_v30 = vsel %vm175_vm8, %v149_v29, 0.0 }
  0x60   :  { %180 = vst [vmem:[#allocation7] sm:$0xff] %v176_v30 }
  0x61   :  { %280 = shalt.err (!%p277_p0)
}
  0x62   :  { %190 = dma.vmem_to_hbm [thread:$0]  %s188_s1, 128, %s336_s2, [#allocation4]  }
  0x63   :  { %293 = dma.done.wait [#allocation4], 128  }
  0x64   :  { %294 = vsyncadd [#allocation4], 4294967168 }
  0x65   :  { %194 = vsyncpa [#allocation3], 1 }
  0x66   :  { %195 = vsyncpa [#allocation6], 1 }
  0x67   :  { %196 = vsyncpa [#allocation4], 1 }

</bundles_post_ra>
